<compile_context>
chip_gen: v6e
topology: v6e:2x2x1
jax: 0.10.0
libtpu: 0.0.40
codegen_flags: <defaults>
</compile_context>

<pallas_src>
import numpy as np
import jax
import jax.numpy as jnp
from jax.experimental import pallas as pl
from jax.experimental.pallas import tpu as pltpu


LANE = 128                 # feature dims padded to the lane width
DEFAULT_TM = 1024          # adjacency row-tile (big, per review)
DEFAULT_TK = 512           # adjacency col-tile (decoupled from tm)
RESIDENT_SUPPORT_BUDGET = 24 * 1024 * 1024   # VMEM allowed for resident support (double-buffered)
VMEM_CAP = 48 * 1024 * 1024                  # stay under v7x's 64 MiB physical per-TC


def _round_up(x, m):
    return (x + m - 1) // m * m


# ---------------------------------------------------------------------------
# Kernel 1: feature transform   support = x @ W    (hoisted out of the SpMM)
# ---------------------------------------------------------------------------
def _feat_kernel(x_ref, w_ref, o_ref):
    o_ref[...] = jnp.dot(
        x_ref[...], w_ref[...], preferred_element_type=jnp.float32
    ).astype(o_ref.dtype)


def _feature_transform(x, w, *, tm, out_dtype=jnp.bfloat16):
    n, f_in = x.shape
    f_out = w.shape[1]
    return pl.pallas_call(
        _feat_kernel,
        out_shape=jax.ShapeDtypeStruct((n, f_out), out_dtype),
        grid_spec=pltpu.PrefetchScalarGridSpec(
            num_scalar_prefetch=0,
            grid=(n // tm,),
            in_specs=[
                pl.BlockSpec((tm, f_in), lambda i: (i, 0)),
                pl.BlockSpec((f_in, f_out), lambda i: (0, 0)),
            ],
            out_specs=pl.BlockSpec((tm, f_out), lambda i: (i, 0)),
        ),
        compiler_params=pltpu.CompilerParams(
            dimension_semantics=("parallel",),
        ),
    )(x, w)


# ---------------------------------------------------------------------------
# Kernel 2: block-sparse SpMM + bias   out = dequant(adj_i8) @ support + b
# ---------------------------------------------------------------------------
def _make_spmm_kernel(*, resident, max_blk, tk, scale):
    def kernel(nblk_ref, colid_ref, adj_ref, sup_ref, b_ref, o_ref, acc_ref):
        i = pl.program_id(0)
        j = pl.program_id(1)

        @pl.when(j == 0)
        def _():
            acc_ref[...] = jnp.zeros_like(acc_ref)

        # Accumulate only this row-tile's nonzero adjacency blocks; padded
        # block-CSR slots are compute-gated here (their DMAs are already
        # skipped because the padded column id repeats the previous one).
        @pl.when(j < nblk_ref[i])
        def _():
            a = adj_ref[...].astype(jnp.bfloat16)   # int8 -> bf16 (exact); VPU op in slack
            if resident:
                col = colid_ref[i * max_blk + j]
                start = pl.multiple_of(col * tk, tk)
                s = sup_ref[pl.ds(start, tk), :]    # slice VMEM-resident support
            else:
                s = sup_ref[...]
            acc_ref[...] += jnp.dot(a, s, preferred_element_type=jnp.float32)

        @pl.when(j == pl.num_programs(1) - 1)
        def _():
            # Dequantize the int8 adjacency (global scale) and add the bias.
            o_ref[...] = (acc_ref[...] * scale + b_ref[...]).astype(o_ref.dtype)

    return kernel


def _spmm_bias(nblk, colid, adj_q, support, b, *, tm, tk, max_blk, nnz_blocks,
               scale, out_dtype, resident):
    n_pad = adj_q.shape[0]
    f_out = support.shape[1]
    nrt = n_pad // tm

    # Scalar-prefetched block-CSR metadata drives the k-axis index maps, so
    # zero adjacency blocks are never multiplied; padded slots repeat the last
    # real column id, so their HBM->VMEM DMAs are skipped as well.
    def adj_map(i, j, nblk_ref, colid_ref):
        return (i, colid_ref[i * max_blk + j])

    if resident:
        sup_spec = pl.BlockSpec((n_pad, f_out),
                                lambda i, j, nblk_ref, colid_ref: (0, 0))
    else:
        sup_spec = pl.BlockSpec((tk, f_out),
                                lambda i, j, nblk_ref, colid_ref:
                                (colid_ref[i * max_blk + j], 0))

    # VMEM budget (double-buffered inputs + output block + f32 accumulator +
    # in-kernel int8->bf16 cast temporary), with headroom; capped for v7x.
    out_itemsize = np.dtype(out_dtype).itemsize
    vmem_used = (2 * tm * tk                                            # int8 adj blocks
                 + (2 * n_pad * f_out * 2 if resident else 2 * tk * f_out * 2)
                 + 2 * tm * f_out * out_itemsize                        # output blocks
                 + tm * f_out * 4                                       # f32 accumulator
                 + tm * tk * 2                                          # cast temporary
                 + 2 * f_out * 4)                                       # bias
    vmem_limit = int(min(max(32 * 1024 * 1024, 2 * vmem_used), VMEM_CAP))

    cost = pl.CostEstimate(
        flops=2 * nnz_blocks * tm * tk * f_out,
        transcendentals=0,
        bytes_accessed=(nnz_blocks * tm * tk * adj_q.dtype.itemsize
                        + (n_pad if resident else nnz_blocks * tk)
                        * f_out * support.dtype.itemsize
                        + n_pad * f_out * out_itemsize),
    )

    kernel = _make_spmm_kernel(resident=resident, max_blk=max_blk, tk=tk,
                               scale=scale)

    return pl.pallas_call(
        kernel,
        out_shape=jax.ShapeDtypeStruct((n_pad, f_out), out_dtype),
        grid_spec=pltpu.PrefetchScalarGridSpec(
            num_scalar_prefetch=2,
            grid=(nrt, max_blk),
            in_specs=[
                pl.BlockSpec((tm, tk), adj_map),
                sup_spec,
                pl.BlockSpec((1, f_out), lambda i, j, nblk_ref, colid_ref: (0, 0)),
            ],
            out_specs=pl.BlockSpec(
                (tm, f_out), lambda i, j, nblk_ref, colid_ref: (i, 0)),
            scratch_shapes=[pltpu.VMEM((tm, f_out), jnp.float32)],
        ),
        compiler_params=pltpu.CompilerParams(
            dimension_semantics=("parallel", "arbitrary"),
            vmem_limit_bytes=vmem_limit,
        ),
        cost_estimate=cost,
    )(nblk, colid, adj_q, support, b)


# ---------------------------------------------------------------------------
# Host-side, cacheable adjacency preprocessing
# ---------------------------------------------------------------------------
def _block_csr_metadata(adj_np, tm, tk):
    n_pad = adj_np.shape[0]
    nrt, nct = n_pad // tm, n_pad // tk
    nz = (adj_np.reshape(nrt, tm, nct, tk) != 0.0).any(axis=(1, 3))   # (nrt, nct)
    nblk = nz.sum(axis=1).astype(np.int32)
    max_blk = max(int(nblk.max()), 1)
    colid = np.zeros((nrt, max_blk), np.int32)
    for r in range(nrt):
        cols = np.flatnonzero(nz[r])
        if cols.size:
            colid[r, :cols.size] = cols
            # Pad with the LAST real column id: padded grid slots resolve to
            # the same block index as the previous step, so Pallas skips their
            # DMAs entirely (compute is still gated by `j < nblk[i]`).
            colid[r, cols.size:] = cols[-1]
        # else: row tile has no nonzero blocks -> leave 0 (fully compute-gated).
    nnz_blocks = int(nblk.sum())
    return (jnp.asarray(nblk), jnp.asarray(colid.reshape(-1)), max_blk, nnz_blocks)


def prepare_adj(adj, *, tm=DEFAULT_TM, tk=DEFAULT_TK):
    """Pad, build block-CSR metadata, and int8-quantize a concrete adjacency.

    Build once and reuse across layers / forward calls (the adjacency must be
    concrete because the block-CSR table is computed on the host).
    """
    adj_np = np.asarray(adj, dtype=np.float32)
    n = adj_np.shape[0]

    # Clamp tile sizes to the (256-aligned) problem size; tm and tk independent.
    n_min = _round_up(n, 256)
    tm = int(min(tm, n_min))
    tk = int(min(tk, n_min))
    n_pad = int(_round_up(n, int(np.lcm(tm, tk))))

    adj_pad = np.zeros((n_pad, n_pad), np.float32)
    adj_pad[:n, :n] = adj_np

    nblk, colid, max_blk, nnz_blocks = _block_csr_metadata(adj_pad, tm, tk)

    # int8 quantization with a single global scale (row-normalized adj is
    # non-negative and bounded); dequantization happens in the SpMM epilogue.
    max_abs = float(np.abs(adj_pad).max())
    scale = max_abs / 127.0 if max_abs > 0.0 else 1.0
    adj_q = jnp.asarray(
        np.clip(np.round(adj_pad / scale), -127, 127).astype(np.int8))

    return dict(adj_q=adj_q, scale=scale, nblk=nblk, colid=colid,
                max_blk=max_blk, nnz_blocks=nnz_blocks,
                n=n, n_pad=n_pad, tm=tm, tk=tk)


# ---------------------------------------------------------------------------
# Layer / model wrappers
# ---------------------------------------------------------------------------
def gcn_layer(prep, x_p, w_p, b_p, *, out_dtype, resident=None):
    """One GCN layer on padded inputs: adj @ (x @ W) + b."""
    tm, tk = prep["tm"], prep["tk"]
    f_out = w_p.shape[1]
    support = _feature_transform(x_p, w_p, tm=tm)      # (n_pad, f_out) bf16
    if resident is None:
        # Keep the whole support resident in VMEM when the (double-buffered)
        # copy fits the budget; removes all duplicate support fetches.
        resident = 2 * prep["n_pad"] * f_out * 2 <= RESIDENT_SUPPORT_BUDGET
    return _spmm_bias(prep["nblk"], prep["colid"], prep["adj_q"], support, b_p,
                      tm=tm, tk=tk, max_blk=prep["max_blk"],
                      nnz_blocks=prep["nnz_blocks"], scale=prep["scale"],
                      out_dtype=out_dtype, resident=resident)


def spgcn_forward(adj, x, params, *, tm=DEFAULT_TM, tk=DEFAULT_TK,
                  prep=None, resident=None):
    """SpGCN.forward(adj, x): gc1 -> dropout(eval: id) -> gc2 -> dropout(eval: id)."""
    w1, b1, w2, b2 = params
    if prep is None:
        prep = prepare_adj(adj, tm=tm, tk=tk)
    n, n_pad = prep["n"], prep["n_pad"]
    f_in = x.shape[1]
    hid, emb = w1.shape[1], w2.shape[1]
    hid_p = _round_up(hid, LANE)
    emb_p = _round_up(emb, LANE)

    # HBM-bound operands in bf16; feature dims padded to lane multiples so the
    # SpMM's lane axis (and output stores) are dense 128-wide.
    x_p = jnp.zeros((n_pad, f_in), jnp.bfloat16).at[:n, :].set(
        jnp.asarray(x, jnp.bfloat16))
    w1_p = jnp.zeros((f_in, hid_p), jnp.bfloat16).at[:, :hid].set(
        jnp.asarray(w1, jnp.bfloat16))
    b1_p = jnp.zeros((1, hid_p), jnp.float32).at[:, :hid].set(b1)
    w2_p = jnp.zeros((hid_p, emb_p), jnp.bfloat16).at[:hid, :emb].set(
        jnp.asarray(w2, jnp.bfloat16))
    b2_p = jnp.zeros((1, emb_p), jnp.float32).at[:, :emb].set(b2)

    # Layer 1 (intermediate h kept in bf16 to halve its HBM round-trip).
    h = gcn_layer(prep, x_p, w1_p, b1_p, out_dtype=jnp.bfloat16, resident=resident)
    # Layer 2 (final output in f32).
    out_p = gcn_layer(prep, h, w2_p, b2_p, out_dtype=jnp.float32, resident=resident)
    return out_p[:n, :emb]


# ---------------------------------------------------------------------------
# Params / reference
# ---------------------------------------------------------------------------
def init_params(key, init_dim, hid_dim, embed_dim):
    k1, k2, k3, k4 = jax.random.split(key, 4)

    def xavier(k, fan_in, fan_out):
        limit = (6.0 / (fan_in + fan_out)) ** 0.5
        return jax.random.uniform(k, (fan_in, fan_out), jnp.float32, -limit, limit)

    def bias(k, fan_out):
        stdv = 1.0 / (fan_out ** 0.5)
        return jax.random.uniform(k, (1, fan_out), jnp.float32, -stdv, stdv)

    w1 = xavier(k1, init_dim, hid_dim)
    b1 = bias(k3, hid_dim)
    w2 = xavier(k2, hid_dim, embed_dim)
    b2 = bias(k4, embed_dim)
    return (w1, b1, w2, b2)


def reference_forward(adj, x, params):
    """Plain-JAX f32 reference."""
    w1, b1, w2, b2 = params
    h = adj @ (x @ w1) + b1
    return adj @ (h @ w2) + b2


if __name__ == "__main__":
    # Small shapes implied by the module: N nodes, init_dim -> hid_dim -> embed_dim.
    N, INIT_DIM, HID_DIM, EMBED_DIM = 512, 8, 32, 16

    key = jax.random.PRNGKey(0)
    k_adj, k_x, k_p = jax.random.split(key, 3)

    x = jax.random.normal(k_x, (N, INIT_DIM), jnp.float32)

    # Sparse, community-structured, row-normalized adjacency with self-loops.
    # Community 0 = nodes [0, 256) has no edges into [256, 512), so with 256
    # tiles the (0,1) adjacency block is exactly zero and the block-CSR SpMM
    # skips it (both its DMA and its matmul).
    half = N // 2
    a = (jax.random.uniform(k_adj, (N, N)) < 0.05).astype(jnp.float32)
    a = a.at[:half, half:].set(0.0)
    a = jnp.minimum(a + jnp.eye(N, dtype=jnp.float32), 1.0)
    adj = a / jnp.sum(a, axis=1, keepdims=True)

    params = init_params(k_p, INIT_DIM, HID_DIM, EMBED_DIM)
    ref = reference_forward(adj, x, params)

    # int8-quantized adj + bf16 operands vs an f32 reference -> loose tolerance.
    ATOL = RTOL = 4e-2

    def check(out, tag):
        out = jax.block_until_ready(out)
        assert out.shape == (N, EMBED_DIM)
        max_err = float(jnp.max(jnp.abs(out - ref)))
        assert jnp.allclose(out, ref, atol=ATOL, rtol=RTOL), (
            f"{tag}: mismatch vs reference (max abs err {max_err})")

    # Run 1: small 256-tiles (multi-tile grid, skipped zero block, repeated
    # colid padding, in-kernel dynamic support slicing), VMEM-resident support.
    prep_small = prepare_adj(adj, tm=256, tk=256)
    check(spgcn_forward(adj, x, params, prep=prep_small), "resident/256")

    # Run 2: same tiling, streaming (per-block) support path.
    check(spgcn_forward(adj, x, params, prep=prep_small, resident=False),
          "streaming/256")

    # Run 3: default (large) tiles, clamped to the padded problem size.
    check(spgcn_forward(adj, x, params), "resident/default")

    print("KERNEL_OK")
</pallas_src>

<mosaic_0001>
module attributes {stable_mosaic.version = 11 : i64} {
  func.func @_feat_kernel(%arg0: i32, %arg1: memref<256x8xbf16, #tpu.memory_space<vmem>>, %arg2: memref<8x128xbf16, #tpu.memory_space<vmem>>, %arg3: memref<256x128xbf16, #tpu.memory_space<vmem>>) attributes {dimension_semantics = [#tpu.dimension_semantics<parallel>], iteration_bounds = array<i64: 2>, scalar_prefetch = 0 : i64, scratch_operands = 0 : i64, tpu.core_type = #tpu.core_type<tc>, window_params = [{transform_indices = @transform_0, window_bounds = array<i64: 256, 8>}, {pipeline_mode = #tpu.pipeline_mode<synchronous>, transform_indices = @transform_1, window_bounds = array<i64: 8, 128>}, {transform_indices = @transform_2, window_bounds = array<i64: 256, 128>}]} {
    %c0 = arith.constant 0 : index
    %c0_0 = arith.constant 0 : index
    %0 = vector.load %arg1[%c0, %c0_0] : memref<256x8xbf16, #tpu.memory_space<vmem>>, vector<256x8xbf16>
    %c0_1 = arith.constant 0 : index
    %c0_2 = arith.constant 0 : index
    %1 = vector.load %arg2[%c0_1, %c0_2] : memref<8x128xbf16, #tpu.memory_space<vmem>>, vector<8x128xbf16>
    %cst = arith.constant dense<0.000000e+00> : vector<256x128xf32>
    %2 = tpu.matmul %0, %1, %cst {dimension_numbers = #tpu.dot_dimension_numbers<[1], [0], [0], [1], [0, 0, 1, 1], [], []>} : vector<256x8xbf16>, vector<8x128xbf16>, vector<256x128xf32> -> vector<256x128xf32>
    %3 = arith.truncf %2 : vector<256x128xf32> to vector<256x128xbf16>
    %c0_3 = arith.constant 0 : index
    %c0_4 = arith.constant 0 : index
    %4 = vector.load %arg3[%c0_3, %c0_4] : memref<256x128xbf16, #tpu.memory_space<vmem>>, vector<256x128xbf16>
    tpu.vector_store %arg3[%c0_3, %c0_4], %3 {strides = array<i32>} : memref<256x128xbf16, #tpu.memory_space<vmem>>, vector<256x128xbf16>,
    return
  }
  func.func @transform_0(%arg0: i32) -> (i32, i32) {
    %c0_i32 = arith.constant 0 : i32
    %c0_i32_0 = arith.constant 0 : i32
    return %arg0, %c0_i32 : i32, i32
  }
  func.func @transform_1(%arg0: i32) -> (i32, i32) {
    %c0_i32 = arith.constant 0 : i32
    %c0_i32_0 = arith.constant 0 : i32
    %c0_i32_1 = arith.constant 0 : i32
    return %c0_i32, %c0_i32_0 : i32, i32
  }
  func.func @transform_2(%arg0: i32) -> (i32, i32) {
    %c0_i32 = arith.constant 0 : i32
    %c0_i32_0 = arith.constant 0 : i32
    return %arg0, %c0_i32 : i32, i32
  }
}

</mosaic_0001>

<bundles_post_ra>
// kernel: tpu_custom_call.1
= control target key start
LH: loop header
LB: loop body
LE: loop exit
PB: predicated region body
PF: predicated region fallthrough
CT: control target
= control target key end

     0   :  { %7 = vsyncpa [#allocation3], 0  ;;  %s1266_s0 = inlined_call_operand.vmem [shape: bf16[512,8], index: 0, kind: input, shape index: {}]   ;;  %s1267_s1 = inlined_call_operand.vmem [shape: bf16[8,128], index: 1, kind: input, shape index: {}]   ;;  %s1268_s2 = inlined_call_operand.hbm [shape: bf16[512,128], index: 2, kind: output, shape index: {}]  }
   0x1   :  { %9 = vsyncpa [#allocation3 + $0x1], 0  ;;  %s1105_s9 = smov 0   ;;  %s1107_s10 = smov 0  }
   0x2   :  { %s1109_s11 = smov 0   ;;  %s1111_s12 = smov 0  }
   0x3 LB: > { %s1126_s13 = sadd.s32 4294967295, %s1085_s12   ;;  %s709_s14 = sadd.s32 4294967294, %s1085_s12   ;;  %s1085_s12 = sphi %s1111_s12, %s1274_s12   ;;  %s1081_s11 = sphi %s1109_s11, %s1273_s11   ;;  %s1077_s10 = sphi %s1107_s10, %s1272_s10   ;;  %s1073_s9 = sphi %s1105_s9, %s1271_s9  }
   0x4   : > { %s1130_s15 = sadd.s32 1, %s1085_s12   ;;  %s69_s16 = sadd.s32 1, %s1081_s11 }
   0x5   : > { %s66_s17 = ssub.s32 %s1085_s12, %s1130_s15  ;;  %p79_p0 = scmp.ne.s32.totalorder %s1081_s11, %s1077_s10 }
   0x6   : > { %p67_p1 = scmp.eq.s32.totalorder %s66_s17, 0  ;;  %p80_p2 = scmp.eq.s32.totalorder %s1126_s13, 1 }
   0x7   : > { %p85_p3 = scmp.ne.s32.totalorder %s1077_s10, %s1073_s9  ;;  %p86_p4 = scmp.eq.s32.totalorder %s709_s14, 1 }
   0x8   : > { %s1141_s18 = scalar_select %p67_p1, %s1081_s11, %s69_s16  }
   0x9   : > { %p1143_p5 = por %p80_p2, %p79_p0  ;;  %p1147_p6 = por %p86_p4, %p85_p3 }
   0xa   : > { %p712_p7 = scmp.ge.s32.totalorder %s1085_s12, 1  ;;  %p116_p8 = scmp.lt.s32.totalorder %s1085_s12, 3 }
   0xc   : > { %p117_p9 = pnand %p712_p7, %p116_p8 }
   0xd   : > { %s714_s23 = sshll.u32 (!%p117_p9), %s1126_s13, 5  ;;  %s135_s28 = sand.u32 (!%p117_p9), 1, %s1077_s10  }
   0xe   : > { %120 = sbr.rel (%p117_p9) target bundleno = 264 (0x108), region = 28  ;;  %p139_p10 = scmp.lt.s32.totalorder (!%p117_p9), %s714_s23, 63 }
   0xf   : > { %s713_s29 = sshll.u32 (!%p117_p9), %s135_s28, 7  ;;  %s817_s3 = sshll.u32 (!%p117_p9), %s1126_s13, 11 }
  0x10   : > { %s1197_s30 = scalar_lea.vmem (!%p117_p9), [#allocation2], %s713_s29  ;;  %s1217_s7 = scalar_lea.hbm (!%p117_p9), %s1268_s2, %s817_s3 }
  0x11   : > { %s647_s4 = sshll.u32 (!%p117_p9), %s1197_s30, 4  ;;  %s1226_s8 = scalar_lea.sflag (!%p117_p9), [#allocation3], %s135_s28  ;;  %s1219_s4 = int_to_ptr.vmem [resolvable:$true] %s647_s4 }
  0x12   : > { %s1025_s13 = scalar_lea.vmem (!%p117_p9), %s1219_s4, 2048  ;;  %s1087_s14 = smov (!%p117_p9), [#allocation2]  }
  0x13   : > { %v178_v0 = vld [vmem:[%s1267_s1] sm:$0xf]  ;;  %vm308_vm0 = vcmask 1043456   ;;  %s1276_s23 = smov (!%p139_p10, %s714_s23), 63  ;;  %vm259_vm1 = vcmask 64512   ;;  %p1026_p11 = scmp.ne.s32.totalorder %s1219_s4, %s1025_s13 }
  0x14   : > { %966 = vmatprep.subr.msk.bf16.mxu0 %vm308_vm0, %v178_v0  ;;  %967 = vmatprep.subr.msk.bf16.mxu1 %vm308_vm0, %v178_v0  ;;  %v310_v1 = vsel %vm308_vm0, %v178_v0, 0  ;;  %s715_s24 = sshll.u32 %s1276_s23, 2  ;;  %s1029_s16 = sshll.u32 %s1087_s14, 4  ;;  %s1030_s16 = int_to_ptr.vmem [resolvable:$false] %s1029_s16 }
  0x15   : > { %931 = vmatpush3.bf16.msra.mxu0 %v310_v1  ;;  %965 = vmatpush3.bf16.msra.mxu1 %v310_v1  ;;  %s1160_s27 = scalar_lea.vmem %s1266_s0, %s715_s24  ;;  %p1027_p12 = pnand %p1026_p11, %p1143_p5 }
  0x16   : > { %v1009_v2 = vld [vmem:[%s1160_s27] sm:$0xff]   ;;  %v1011_v4 = vld [vmem:[%s1160_s27 + $0x8] sm:$0xff]   ;;  %v1013_v6 = vld [vmem:[%s1160_s27 + $0x10] sm:$0xff]   ;;  %s1031_s17 = scalar_lea.vmem %s1030_s16, 4096  ;;  %p1032_p0 = scmp.lt.s32.totalorder %s1219_s4, %s1030_s16 }
  0x17   : > { %v1010_v3 = vld [vmem:[%s1160_s27 + $0x40] sm:$0xff]   ;;  %932 = vmatprep.mubr.msk.bf16.mxu0 %vm259_vm1, %v1009_v2  ;;  %v1012_v5 = vld [vmem:[%s1160_s27 + $0x48] sm:$0xff]   ;;  %v1014_v7 = vld [vmem:[%s1160_s27 + $0x50] sm:$0xff]   ;;  %p1028_p13 = pneg %p1027_p12  ;;  %p1033_p1 = scmp.lt.s32.totalorder %s1031_s17, %s1025_s13 }
  0x18   : > { %948 = vmatprep.mubr.msk.bf16.mxu1 %vm259_vm1, %v1010_v3  ;;  %933 = vmatmul.mubr.msk.bf16.vlgmr.msra.gmra.mxu0 %vm259_vm1, %v1011_v4  ;;  %v1015_v8 = vld [vmem:[%s1160_s27 + $0x18] sm:$0xff]   ;;  %v1017_v10 = vld [vmem:[%s1160_s27 + $0x20] sm:$0xff]   ;;  %v1019_v12 = vld [vmem:[%s1160_s27 + $0x28] sm:$0xff]  }
  0x19   : > { %949 = vmatmul.mubr.msk.bf16.vlgmr.msra.gmra.mxu1 %vm259_vm1, %v1012_v5  ;;  %936 = vmatprep.mubr.msk.bf16.mxu0 %vm259_vm1, %v1013_v6  ;;  %v1016_v9 = vld [vmem:[%s1160_s27 + $0x58] sm:$0xff]   ;;  %v1018_v11 = vld [vmem:[%s1160_s27 + $0x60] sm:$0xff]   ;;  %v1020_v13 = vld [vmem:[%s1160_s27 + $0x68] sm:$0xff]   ;;  %p1034_p2 = por %p1033_p1, %p1032_p0 }
  0x1a   : > { %952 = vmatprep.mubr.msk.bf16.mxu1 %vm259_vm1, %v1014_v7  ;;  %v1021_v14 = vld [vmem:[%s1160_s27 + $0x30] sm:$0xff]   ;;  %v1023_v16 = vld [vmem:[%s1160_s27 + $0x38] sm:$0xff]  }
  0x1b   : > { %v1022_v15 = vld [vmem:[%s1160_s27 + $0x70] sm:$0xff]   ;;  %v1024_v17 = vld [vmem:[%s1160_s27 + $0x78] sm:$0xff]   ;;  %p1035_p3 = pnand %p1034_p2, %p1028_p13 }
  0x20   : > { %937 = vmatmul.mubr.msk.bf16.gmra.mxu0 %vm259_vm1, %v1015_v8 }
  0x21   : > { %953 = vmatmul.mubr.msk.bf16.gmra.mxu1 %vm259_vm1, %v1016_v9  ;;  %940 = vmatprep.mubr.msk.bf16.mxu0 %vm259_vm1, %v1017_v10 }
  0x22   : > { %956 = vmatprep.mubr.msk.bf16.mxu1 %vm259_vm1, %v1018_v11 }
  0x28   : > { %941 = vmatmul.mubr.msk.bf16.gmra.mxu0 %vm259_vm1, %v1019_v12 }
  0x29   : > { %957 = vmatmul.mubr.msk.bf16.gmra.mxu1 %vm259_vm1, %v1020_v13  ;;  %944 = vmatprep.mubr.msk.bf16.mxu0 %vm259_vm1, %v1021_v14 }
  0x2a   : > { %960 = vmatprep.mubr.msk.bf16.mxu1 %vm259_vm1, %v1022_v15 }
  0x30   : > { %945 = vmatmul.mubr.msk.bf16.gmra.mxu0 %vm259_vm1, %v1023_v16 }
  0x31   : > { %961 = vmatmul.mubr.msk.bf16.gmra.mxu1 %vm259_vm1, %v1024_v17 }
  0xd8   : > { %v934_v18 = vpop.f32.mrf.mxu0 }
  0xd9   : > { %v950_v19 = vpop.f32.mrf.mxu1 }
  0xda   : > { %v346_v20 = vpop.f32.mrf.mxu0 }
  0xdb   : > { %v410_v21 = vpop.f32.mrf.mxu1 }
  0xdc   : > { %v935_v22 = vpop.f32.mrf.mxu0 }
  0xdd   : > { %v826_v23 = vpack.c.bf16 %v935_v22, %v934_v18  ;;  %v951_v24 = vpop.f32.mrf.mxu1 }
  0xde   : > { %v866_v25 = vpack.c.bf16 %v951_v24, %v950_v19  ;;  %v349_v26 = vpop.f32.mrf.mxu0 }
  0xdf   : > { %898 = vst [vmem:[%s1197_s30 + $0x8] sm:$0xff] %v826_v23   ;;  %v821_v27 = vpack.c.bf16 %v349_v26, %v346_v20  ;;  %v413_v28 = vpop.f32.mrf.mxu1 }
  0xe0   : > { %906 = vst [vmem:[%s1197_s30 + $0x48] sm:$0xff] %v866_v25   ;;  %v861_v29 = vpack.c.bf16 %v413_v28, %v410_v21  ;;  %v938_v30 = vpop.f32.mrf.mxu0 }
  0xe1   : > { %822 = vst [vmem:[%s1197_s30] sm:$0xff] %v821_v27   ;;  %v954_v31 = vpop.f32.mrf.mxu1 }
  0xe2   : > { %905 = vst [vmem:[%s1197_s30 + $0x40] sm:$0xff] %v861_v29   ;;  %v362_v32 = vpop.f32.mrf.mxu0 }
  0xe3   : > { %v426_v33 = vpop.f32.mrf.mxu1 }
  0xe4   : > { %v939_v34 = vpop.f32.mrf.mxu0 }
  0xe5   : > { %v836_v35 = vpack.c.bf16 %v939_v34, %v938_v30  ;;  %v955_v36 = vpop.f32.mrf.mxu1 }
  0xe6   : > { %v876_v37 = vpack.c.bf16 %v955_v36, %v954_v31  ;;  %v365_v38 = vpop.f32.mrf.mxu0 }
  0xe7   : > { %900 = vst [vmem:[%s1197_s30 + $0x18] sm:$0xff] %v836_v35   ;;  %v831_v39 = vpack.c.bf16 %v365_v38, %v362_v32  ;;  %v429_v40 = vpop.f32.mrf.mxu1 }
  0xe8   : > { %908 = vst [vmem:[%s1197_s30 + $0x58] sm:$0xff] %v876_v37   ;;  %v871_v41 = vpack.c.bf16 %v429_v40, %v426_v33  ;;  %v942_v42 = vpop.f32.mrf.mxu0 }
  0xe9   : > { %899 = vst [vmem:[%s1197_s30 + $0x10] sm:$0xff] %v831_v39   ;;  %v958_v43 = vpop.f32.mrf.mxu1 }
  0xea   : > { %907 = vst [vmem:[%s1197_s30 + $0x50] sm:$0xff] %v871_v41   ;;  %v378_v44 = vpop.f32.mrf.mxu0 }
  0xeb   : > { %v442_v45 = vpop.f32.mrf.mxu1 }
  0xec   : > { %v943_v46 = vpop.f32.mrf.mxu0 }
  0xed   : > { %v846_v47 = vpack.c.bf16 %v943_v46, %v942_v42  ;;  %v959_v48 = vpop.f32.mrf.mxu1 }
  0xee   : > { %v886_v49 = vpack.c.bf16 %v959_v48, %v958_v43  ;;  %v381_v50 = vpop.f32.mrf.mxu0 }
  0xef   : > { %902 = vst [vmem:[%s1197_s30 + $0x28] sm:$0xff] %v846_v47   ;;  %v841_v51 = vpack.c.bf16 %v381_v50, %v378_v44  ;;  %v445_v52 = vpop.f32.mrf.mxu1 }
  0xf0   : > { %910 = vst [vmem:[%s1197_s30 + $0x68] sm:$0xff] %v886_v49   ;;  %v881_v53 = vpack.c.bf16 %v445_v52, %v442_v45  ;;  %v946_v54 = vpop.f32.mrf.mxu0 }
  0xf1   : > { %901 = vst [vmem:[%s1197_s30 + $0x20] sm:$0xff] %v841_v51   ;;  %v962_v55 = vpop.f32.mrf.mxu1 }
  0xf2   : > { %909 = vst [vmem:[%s1197_s30 + $0x60] sm:$0xff] %v881_v53   ;;  %v394_v56 = vpop.f32.mrf.mxu0 }
  0xf3   : > { %v458_v57 = vpop.f32.mrf.mxu1 }
  0xf4   : > { %v947_v58 = vpop.f32.mrf.mxu0 }
  0xf5   : > { %v856_v59 = vpack.c.bf16 %v947_v58, %v946_v54  ;;  %v963_v60 = vpop.f32.mrf.mxu1 }
  0xf6   : > { %v896_v61 = vpack.c.bf16 %v963_v60, %v962_v55  ;;  %v397_v62 = vpop.f32.mrf.mxu0 }
  0xf7   : > { %904 = vst [vmem:[%s1197_s30 + $0x38] sm:$0xff] %v856_v59   ;;  %v851_v63 = vpack.c.bf16 %v397_v62, %v394_v56  ;;  %v461_v0 = vpop.f32.mrf.mxu1 }
  0xf8   : > { %912 = vst [vmem:[%s1197_s30 + $0x78] sm:$0xff] %v896_v61   ;;  %v891_v1 = vpack.c.bf16 %v461_v0, %v458_v57 }
  0xf9   : > { %903 = vst [vmem:[%s1197_s30 + $0x30] sm:$0xff] %v851_v63  }
  0xfa   : > { %911 = vst [vmem:[%s1197_s30 + $0x70] sm:$0xff] %v891_v1  }
  0xfb   : > { %1038 = shalt.err (!%p1035_p3)
}
  0xfc   : > { %s1039_s21 = scalar_lea.hbm %s1217_s7, 2048  ;;  %s1043_s24 = scalar_lea.hbm %s1268_s2, 4096 }
  0xfd   : > { %p1040_p4 = scmp.ne.s32.totalorder %s1217_s7, %s1039_s21  ;;  %p1044_p9 = scmp.lt.s32.totalorder %s1217_s7, %s1268_s2 }
  0xfe   : > { %p1045_p10 = scmp.lt.s32.totalorder %s1043_s24, %s1039_s21 }
  0xff   : > { %p1041_p7 = pnand %p1040_p4, %p1143_p5 }
 0x100   : > { %p1046_p11 = por %p1045_p10, %p1044_p9 }
 0x101   : > { %p1042_p8 = pneg %p1041_p7 }
 0x103   : > { %p1047_p12 = pnand %p1046_p11, %p1042_p8 }
 0x105   : > { %1050 = shalt.err (!%p1047_p12)
}
 0x106   : > { %s1088_s27 = smov 64   ;;  %s1089_s28 = smov 4  }
 0x107   : > { %968 = dma.vmem_to_hbm [thread:$0]  (%p1143_p5), %s1219_s4, 2048, %s1217_s7, %s1226_s8, %s1088_s27, %s1088_s27, %s1089_s28  }
 0x108 PF: > { %p974_p13 = scmp.ge.s32.totalorder %s1085_s12, 2  ;;  %s662_s29 = sand.u32 1, %s1073_s9  }
 0x109   : > { %s663_s30 = scalar_lea.sflag [#allocation3], %s662_s29 }
 0x10a   : > { %p971_p0 = pnand %p974_p13, %p1147_p6 }
 0x10c   : > { %p972_p1 = pneg %p971_p0 }
 0x10e   : > { %1068 = dma.done.wait (%p972_p1), %s663_s30, 2048  }
 0x10f   : > { %1070 = vsyncadd (%p972_p1), %s663_s30, 4294965248  ;;  %p12_p2 = scmp.ge.s32.totalorder %s1130_s15, 4   ;;  %s1271_s9 = smov %s1077_s10 }
 0x110   : > { %s1272_s10 = smov %s1081_s11  ;;  %s1273_s11 = smov %s1141_s18 }
 0x111   : > { %s1274_s12 = smov %s1130_s15  ;;  %14 = sbr.rel (!%p12_p2) target bundleno = 3 (0x3), region = 63 }
 0x116   :  { %668 = vsyncpa [#allocation3], 1 }
 0x117   :  { %670 = vsyncpa [#allocation3 + $0x1], 1 }

</bundles_post_ra>
